<compile_context>
chip_gen: v5e
topology: v5e:2x2
jax: 0.10.0
libtpu: 0.0.40
codegen_flags: <defaults>
</compile_context>

<pallas_src>
import functools

import jax
import jax.numpy as jnp
from jax.experimental import pallas as pl
from jax.experimental.pallas import tpu as pltpu

LANES = 128
NEG_SLOPE = 0.01


def implicit_net_kernel(x_ref, w0_ref, b0_ref, w1_ref, b1_ref, w2_ref, b2_ref,
                        o_ref, *, act_dtype):
    """Fused 3-layer MLP in (feature, batch) layout.

    x_ref : (d_in, tile_n)   bf16 (MXU input dtype)
    w*_ref: (out_d, in_d)    bf16
    b*_ref: (out_d, 1)       f32
    o_ref : (1, tile_n)      f32  (lane-dense output slab)
    """
    cdt = w0_ref.dtype                       # MXU input dtype (bf16)
    neg = jnp.asarray(NEG_SLOPE, act_dtype)

    x = x_ref[...]                           # (d_in, tile_n)

    # layer 0: (h0, d_in) @ (d_in, tile_n) -> (h0, tile_n), f32 accumulate
    h = jnp.dot(w0_ref[...], x, preferred_element_type=jnp.float32)
    h = (h + b0_ref[...]).astype(act_dtype)
    h = jnp.maximum(h, neg * h)              # LeakyReLU(0.01)

    # layer 1
    h = jnp.dot(w1_ref[...], h.astype(cdt), preferred_element_type=jnp.float32)
    h = (h + b1_ref[...]).astype(act_dtype)
    h = jnp.maximum(h, neg * h)

    # layer 2 (no LeakyReLU), then tanh in f32
    h = jnp.dot(w2_ref[...], h.astype(cdt), preferred_element_type=jnp.float32)
    h = h + b2_ref[...]
    o_ref[...] = jnp.tanh(h).astype(o_ref.dtype)


def _chip_info():
    """Best-effort hardware query; conservative fallbacks if unavailable."""
    kind = ""
    try:
        kind = jax.devices()[0].device_kind.lower()
    except Exception:
        pass
    try:
        cap = int(pltpu.get_tpu_info().vmem_capacity_bytes)
        cap = max(cap, 16 * 2**20)
    except Exception:
        cap = 64 * 2**20                     # conservative (v7x-sized) fallback
    num_tc = 2 if "v7" in kind else 1
    # bf16 VALU/EUP exists on v6e/v7x; keep f32 activation math elsewhere.
    act_dtype = jnp.bfloat16 if ("v6" in kind or "v7" in kind) else jnp.float32
    return cap, num_tc, act_dtype


def _choose_tiling(N, d_in, d_out, h_max, act_bytes, vmem_budget, tile_target,
                   num_tc):
    """Balanced batch tiling: pick grid first, then split columns evenly."""
    n128 = pl.cdiv(N, LANES) * LANES
    # per-column VMEM footprint estimate (double-buffered x & out + live hiddens)
    bytes_per_col = (2 * d_in * 2            # bf16 x, double-buffered
                     + 2 * d_out * 4         # f32 out slab, double-buffered
                     + 4 * h_max * act_bytes)  # live hidden/intermediate buffers
    max_tile = max(LANES, (int(vmem_budget) // bytes_per_col) // LANES * LANES)
    tile_target = max(LANES, (int(tile_target) // LANES) * LANES)
    tile_target = min(tile_target, max_tile)

    grid = pl.cdiv(n128, tile_target)
    # only force a >=2-way split on chips that actually have 2 TensorCores
    if num_tc >= 2 and grid < num_tc and n128 >= num_tc * LANES:
        grid = num_tc
    tile = pl.cdiv(pl.cdiv(n128, grid), LANES) * LANES
    n_pad = grid * tile
    return grid, tile, n_pad


def implicit_net_forward(x, params, *, tile_n=32768, mxu_dtype=jnp.bfloat16):
    """x: (N, d_in) float32. params: w{0,1,2} as (out,in), b{0,1,2} as (out,1).

    Returns (N, 1) float32, matching the PyTorch forward.
    """
    N, d_in = x.shape

    w0, b0 = params["w0"], params["b0"]
    w1, b1 = params["w1"], params["b1"]
    w2, b2 = params["w2"], params["b2"]

    h0 = w0.shape[0]
    h1 = w1.shape[0]
    d_out = w2.shape[0]                      # == 1

    cap, num_tc, act_dtype = _chip_info()
    act_bytes = jnp.dtype(act_dtype).itemsize

    # --- batch tiling (lane axis), sized for this chip's VMEM ----------------
    vmem_budget = int(0.40 * cap)            # tile-sizing budget (headroom kept)
    grid_n, tile_eff, n_pad = _choose_tiling(
        N, d_in, d_out, max(h0, h1), act_bytes, vmem_budget, tile_n, num_tc)
    vmem_limit = int(max(32 * 2**20, min(0.9 * cap, 128 * 2**20)))

    # --- wrapper-side layout plumbing: cast -> transpose -> pad --------------
    # cast first so the transpose/pad HBM pass moves half the bytes
    x_t = jnp.pad(x.astype(mxu_dtype).T, ((0, 0), (0, n_pad - N)))  # (d_in, n_pad)

    w0c = w0.astype(mxu_dtype)
    w1c = w1.astype(mxu_dtype)
    w2c = w2.astype(mxu_dtype)
    b0f = b0.astype(jnp.float32)
    b1f = b1.astype(jnp.float32)
    b2f = b2.astype(jnp.float32)

    # constant-index full blocks for the small weights/biases (stay resident)
    full = lambda shape: pl.BlockSpec(shape, lambda i: (0, 0))

    kernel = functools.partial(implicit_net_kernel, act_dtype=act_dtype)

    out_t = pl.pallas_call(
        kernel,
        out_shape=jax.ShapeDtypeStruct((d_out, n_pad), jnp.float32),
        grid_spec=pltpu.PrefetchScalarGridSpec(
            num_scalar_prefetch=0,
            grid=(grid_n,),
            in_specs=[
                pl.BlockSpec((d_in, tile_eff), lambda i: (0, i)),  # x (lane-dense)
                full((h0, d_in)), full((h0, 1)),                   # w0, b0
                full((h1, h0)),   full((h1, 1)),                   # w1, b1
                full((d_out, h1)), full((d_out, 1)),               # w2, b2
            ],
            out_specs=pl.BlockSpec((d_out, tile_eff), lambda i: (0, i)),
        ),
        compiler_params=pltpu.CompilerParams(
            dimension_semantics=("parallel",),
            vmem_limit_bytes=vmem_limit),
    )(x_t, w0c, b0f, w1c, b1f, w2c, b2f)

    # back to (N, 1) row-major, dropping batch padding
    return out_t[:, :N].T


def init_params(key, d_in, dims):
    """Deterministic init matching ImplicitNet(d_in, dims) layer shapes.

    Weights stored torch-style (out, in); biases as (out, 1).
    """
    full_dims = [d_in] + dims + [1]
    params = {}
    for layer in range(len(full_dims) - 1):
        in_d, out_d = full_dims[layer], full_dims[layer + 1]
        key, kw, kb = jax.random.split(key, 3)
        bound = 1.0 / jnp.sqrt(in_d)
        params[f"w{layer}"] = jax.random.uniform(
            kw, (out_d, in_d), jnp.float32, minval=-bound, maxval=bound)
        params[f"b{layer}"] = jax.random.uniform(
            kb, (out_d, 1), jnp.float32, minval=-bound, maxval=bound)
    return params


def reference_forward(x, params, *, mxu_dtype=jnp.bfloat16,
                      act_dtype=jnp.float32):
    """Plain-JAX reference matching the kernel math (same dtype chain)."""
    neg = jnp.asarray(NEG_SLOPE, act_dtype)
    h = x.astype(mxu_dtype)
    for layer in range(2):
        w = params[f"w{layer}"].astype(mxu_dtype)    # (out, in)
        b = params[f"b{layer}"].astype(jnp.float32)  # (out, 1)
        h = jnp.dot(h, w.T, preferred_element_type=jnp.float32) + b.T
        h = h.astype(act_dtype)
        h = jnp.maximum(h, neg * h)
        h = h.astype(mxu_dtype)
    w = params["w2"].astype(mxu_dtype)
    b = params["b2"].astype(jnp.float32)
    h = jnp.dot(h, w.T, preferred_element_type=jnp.float32) + b.T
    return jnp.tanh(h)


if __name__ == "__main__":
    d_in = 4
    dims = [32, 32]        # ImplicitNet(4, [32, 32]) -> layers 4->32->32->1

    _, _, act_dtype = _chip_info()

    key = jax.random.PRNGKey(0)
    key, kx, kx2 = jax.random.split(key, 3)
    params = init_params(key, d_in, dims)

    # small batch (single-tile path)
    N = 16
    x = jax.random.normal(kx, (N, d_in), jnp.float32)
    out = jax.block_until_ready(implicit_net_forward(x, params))
    ref = reference_forward(x, params, act_dtype=act_dtype)
    assert out.shape == (N, 1)
    assert jnp.allclose(out, ref, atol=2e-3, rtol=2e-3), "mismatch vs reference"

    # non-multiple batch (padding path, balanced tiling)
    N2 = 300
    x2 = jax.random.normal(kx2, (N2, d_in), jnp.float32)
    out2 = jax.block_until_ready(implicit_net_forward(x2, params))
    ref2 = reference_forward(x2, params, act_dtype=act_dtype)
    assert out2.shape == (N2, 1)
    assert jnp.allclose(out2, ref2, atol=2e-3, rtol=2e-3), \
        "mismatch vs reference (padded)"

    # force a small tile to exercise the multi-step grid path on small N
    out3 = jax.block_until_ready(implicit_net_forward(x2, params, tile_n=256))
    assert out3.shape == (N2, 1)
    assert jnp.allclose(out3, ref2, atol=2e-3, rtol=2e-3), \
        "mismatch vs reference (multi-tile)"

    print("KERNEL_OK")
</pallas_src>

<mosaic_0001>
module attributes {stable_mosaic.version = 11 : i64} {
  func.func @implicit_net_kernel(%arg0: i32, %arg1: memref<4x128xbf16, #tpu.memory_space<vmem>>, %arg2: memref<32x4xbf16, #tpu.memory_space<vmem>>, %arg3: memref<32x1xf32, #tpu.memory_space<vmem>>, %arg4: memref<32x32xbf16, #tpu.memory_space<vmem>>, %arg5: memref<32x1xf32, #tpu.memory_space<vmem>>, %arg6: memref<1x32xbf16, #tpu.memory_space<vmem>>, %arg7: memref<1x1xf32, #tpu.memory_space<vmem>>, %arg8: memref<1x128xf32, #tpu.memory_space<vmem>>) attributes {dimension_semantics = [#tpu.dimension_semantics<parallel>], iteration_bounds = array<i64: 1>, scalar_prefetch = 0 : i64, scratch_operands = 0 : i64, tpu.core_type = #tpu.core_type<tc>, window_params = [{transform_indices = @transform_0, window_bounds = array<i64: 4, 128>}, {pipeline_mode = #tpu.pipeline_mode<synchronous>, transform_indices = @transform_1, window_bounds = array<i64: 32, 4>}, {pipeline_mode = #tpu.pipeline_mode<synchronous>, transform_indices = @transform_2, window_bounds = array<i64: 32, 1>}, {pipeline_mode = #tpu.pipeline_mode<synchronous>, transform_indices = @transform_3, window_bounds = array<i64: 32, 32>}, {pipeline_mode = #tpu.pipeline_mode<synchronous>, transform_indices = @transform_4, window_bounds = array<i64: 32, 1>}, {pipeline_mode = #tpu.pipeline_mode<synchronous>, transform_indices = @transform_5, window_bounds = array<i64: 1, 32>}, {pipeline_mode = #tpu.pipeline_mode<synchronous>, transform_indices = @transform_6, window_bounds = array<i64: 1, 1>}, {transform_indices = @transform_7, window_bounds = array<i64: 1, 128>}]} {
    %c0 = arith.constant 0 : index
    %c0_0 = arith.constant 0 : index
    %0 = vector.load %arg1[%c0, %c0_0] : memref<4x128xbf16, #tpu.memory_space<vmem>>, vector<4x128xbf16>
    %c0_1 = arith.constant 0 : index
    %c0_2 = arith.constant 0 : index
    %1 = vector.load %arg2[%c0_1, %c0_2] : memref<32x4xbf16, #tpu.memory_space<vmem>>, vector<32x4xbf16>
    %cst = arith.constant dense<0.000000e+00> : vector<32x128xf32>
    %2 = tpu.matmul %1, %0, %cst {dimension_numbers = #tpu.dot_dimension_numbers<[1], [0], [0], [1], [0, 0, 1, 1], [], []>} : vector<32x4xbf16>, vector<4x128xbf16>, vector<32x128xf32> -> vector<32x128xf32>
    %c0_3 = arith.constant 0 : index
    %c0_4 = arith.constant 0 : index
    %3 = vector.load %arg3[%c0_3, %c0_4] : memref<32x1xf32, #tpu.memory_space<vmem>>, vector<32x1xf32>
    %4 = vector.broadcast %3 : vector<32x1xf32> to vector<32x128xf32>
    %5 = arith.addf %2, %4 : vector<32x128xf32>
    %cst_5 = arith.constant 0.00999999977 : f32
    %6 = vector.broadcast %cst_5 : f32 to vector<32x128xf32>
    %7 = arith.mulf %6, %5 : vector<32x128xf32>
    %8 = arith.maximumf %5, %7 : vector<32x128xf32>
    %c0_6 = arith.constant 0 : index
    %c0_7 = arith.constant 0 : index
    %9 = vector.load %arg4[%c0_6, %c0_7] : memref<32x32xbf16, #tpu.memory_space<vmem>>, vector<32x32xbf16>
    %10 = arith.truncf %8 : vector<32x128xf32> to vector<32x128xbf16>
    %cst_8 = arith.constant dense<0.000000e+00> : vector<32x128xf32>
    %11 = tpu.matmul %9, %10, %cst_8 {dimension_numbers = #tpu.dot_dimension_numbers<[1], [0], [0], [1], [0, 0, 1, 1], [], []>} : vector<32x32xbf16>, vector<32x128xbf16>, vector<32x128xf32> -> vector<32x128xf32>
    %c0_9 = arith.constant 0 : index
    %c0_10 = arith.constant 0 : index
    %12 = vector.load %arg5[%c0_9, %c0_10] : memref<32x1xf32, #tpu.memory_space<vmem>>, vector<32x1xf32>
    %13 = vector.broadcast %12 : vector<32x1xf32> to vector<32x128xf32>
    %14 = arith.addf %11, %13 : vector<32x128xf32>
    %cst_11 = arith.constant 0.00999999977 : f32
    %15 = vector.broadcast %cst_11 : f32 to vector<32x128xf32>
    %16 = arith.mulf %15, %14 : vector<32x128xf32>
    %17 = arith.maximumf %14, %16 : vector<32x128xf32>
    %c0_12 = arith.constant 0 : index
    %c0_13 = arith.constant 0 : index
    %18 = vector.load %arg6[%c0_12, %c0_13] : memref<1x32xbf16, #tpu.memory_space<vmem>>, vector<1x32xbf16>
    %19 = arith.truncf %17 : vector<32x128xf32> to vector<32x128xbf16>
    %cst_14 = arith.constant dense<0.000000e+00> : vector<1x128xf32>
    %20 = tpu.matmul %18, %19, %cst_14 {dimension_numbers = #tpu.dot_dimension_numbers<[1], [0], [0], [1], [0, 0, 1, 1], [], []>} : vector<1x32xbf16>, vector<32x128xbf16>, vector<1x128xf32> -> vector<1x128xf32>
    %c0_15 = arith.constant 0 : index
    %c0_16 = arith.constant 0 : index
    %21 = vector.load %arg7[%c0_15, %c0_16] : memref<1x1xf32, #tpu.memory_space<vmem>>, vector<1x1xf32>
    %22 = vector.broadcast %21 : vector<1x1xf32> to vector<1x128xf32>
    %23 = arith.addf %20, %22 : vector<1x128xf32>
    %24 = math.tanh %23 : vector<1x128xf32>
    %c0_17 = arith.constant 0 : index
    %c0_18 = arith.constant 0 : index
    %25 = vector.load %arg8[%c0_17, %c0_18] : memref<1x128xf32, #tpu.memory_space<vmem>>, vector<1x128xf32>
    tpu.vector_store %arg8[%c0_17, %c0_18], %24 {strides = array<i32>} : memref<1x128xf32, #tpu.memory_space<vmem>>, vector<1x128xf32>,
    return
  }
  func.func @transform_0(%arg0: i32) -> (i32, i32) {
    %c0_i32 = arith.constant 0 : i32
    %c0_i32_0 = arith.constant 0 : i32
    return %c0_i32, %arg0 : i32, i32
  }
  func.func @transform_1(%arg0: i32) -> (i32, i32) {
    %c0_i32 = arith.constant 0 : i32
    %c0_i32_0 = arith.constant 0 : i32
    %c0_i32_1 = arith.constant 0 : i32
    return %c0_i32, %c0_i32_0 : i32, i32
  }
  func.func @transform_2(%arg0: i32) -> (i32, i32) {
    %c0_i32 = arith.constant 0 : i32
    %c0_i32_0 = arith.constant 0 : i32
    %c0_i32_1 = arith.constant 0 : i32
    return %c0_i32, %c0_i32_0 : i32, i32
  }
  func.func @transform_3(%arg0: i32) -> (i32, i32) {
    %c0_i32 = arith.constant 0 : i32
    %c0_i32_0 = arith.constant 0 : i32
    %c0_i32_1 = arith.constant 0 : i32
    return %c0_i32, %c0_i32_0 : i32, i32
  }
  func.func @transform_4(%arg0: i32) -> (i32, i32) {
    %c0_i32 = arith.constant 0 : i32
    %c0_i32_0 = arith.constant 0 : i32
    %c0_i32_1 = arith.constant 0 : i32
    return %c0_i32, %c0_i32_0 : i32, i32
  }
  func.func @transform_5(%arg0: i32) -> (i32, i32) {
    %c0_i32 = arith.constant 0 : i32
    %c0_i32_0 = arith.constant 0 : i32
    %c0_i32_1 = arith.constant 0 : i32
    return %c0_i32, %c0_i32_0 : i32, i32
  }
  func.func @transform_6(%arg0: i32) -> (i32, i32) {
    %c0_i32 = arith.constant 0 : i32
    %c0_i32_0 = arith.constant 0 : i32
    %c0_i32_1 = arith.constant 0 : i32
    return %c0_i32, %c0_i32_0 : i32, i32
  }
  func.func @transform_7(%arg0: i32) -> (i32, i32) {
    %c0_i32 = arith.constant 0 : i32
    %c0_i32_0 = arith.constant 0 : i32
    return %c0_i32, %arg0 : i32, i32
  }
}

</mosaic_0001>

<bundles_post_ra>
// kernel: tpu_custom_call.1
= control target key start
LH: loop header
LB: loop body
LE: loop exit
PB: predicated region body
PF: predicated region fallthrough
CT: control target
= control target key end

     0   :  { %s378_s0 = inlined_call_operand.vmem [shape: bf16[4,128], index: 0, kind: input, shape index: {}]   ;;  %s379_s1 = inlined_call_operand.vmem [shape: bf16[32,4], index: 1, kind: input, shape index: {}]   ;;  %s380_s2 = inlined_call_operand.vmem [shape: f32[32,1], index: 2, kind: input, shape index: {}]   ;;  %s381_s3 = inlined_call_operand.vmem [shape: bf16[32,32], index: 3, kind: input, shape index: {}]   ;;  %s382_s4 = inlined_call_operand.vmem [shape: f32[32,1], index: 4, kind: input, shape index: {}]   ;;  %s383_s5 = inlined_call_operand.vmem [shape: bf16[1,32], index: 5, kind: input, shape index: {}]   ;;  %s384_s6 = inlined_call_operand.<no memory space> [shape: f32[1,1], index: 6, kind: input, shape index: {}]   ;;  %s385_s7 = inlined_call_operand.hbm [shape: f32[1,128], index: 7, kind: output, shape index: {}]  }
   0x1   :  { %v12_v0 = vstv %s384_s6 }
   0x2   :  { %13 = vst [vmem:[#allocation2] sm:$0x1] %v12_v0 }
   0x3   :  { %v30_v1 = vld [vmem:[%s378_s0] sm:$0x3]  ;;  %vm76_vm0 = vcmask 1041408   ;;  %v285_v4 = vmov 0   ;;  %v37_v5 = vld [vmem:[%s380_s2 + $0x10] sm:$0xff]  ;;  %vm69_vm1 = vcmask 31744  }
   0x4   :  { %v78_v2 = vsel %vm76_vm0, %v30_v1, 0  ;;  %v246_v3 = vld [vmem:[%s379_s1] sm:$0xff]  ;;  %255 = vset.pattern.permute.xlu1 %v285_v4  ;;  %254 = vset.pattern.permute.xlu0 %v285_v4 }
   0x5   :  { %v35_v6 = vld [vmem:[%s380_s2] sm:$0xff]  ;;  %87 = vmatpush.bf16.msra.mxu0 %v78_v2  ;;  %51 = vperm.xlu0 %254, %v37_v5  }
   0x6   :  { %41 = vperm.xlu1 %255, %v35_v6   ;;  %256 = vset.pattern.permute.xlu2 %v285_v4 }
   0x7   :  { %14 = vsyncpa [#allocation4], 0  ;;  %v38_v7 = vld [vmem:[%s380_s2 + $0x18] sm:$0xff]  ;;  %v36_v8 = vld [vmem:[%s380_s2 + $0x8] sm:$0xff]  ;;  %vm147_vm2 = vcmask 261120   ;;  %s286_s25 = smov [#allocation3]  }
   0x8   :  { %233 = vmatmul.msk.bf16.vlgmr.msra.gmra.mxu0 %vm69_vm1, %v246_v3  ;;  %v113_v9 = vld [vmem:[%s382_s4] sm:$0xff]  ;;  %v114_v10 = vld [vmem:[%s382_s4 + $0x8] sm:$0xff]  ;;  %v115_v14 = vld [vmem:[%s382_s4 + $0x10] sm:$0xff]  ;;  %s214_s26 = sshll.u32 %s286_s25, 4  ;;  %s216_s29 = sshll.u32 %s385_s7, 4  ;;  %s215_s26 = int_to_ptr.vmem [resolvable:$true] %s214_s26  ;;  %s217_s29 = int_to_ptr.hbm [resolvable:$true] %s216_s29 }
   0x9   :  { %v247_v11 = vld [vmem:[%s379_s1 + $0x8] sm:$0xff]  ;;  %129 = vperm.xlu2 %256, %v115_v14   ;;  %v116_v17 = vld [vmem:[%s382_s4 + $0x18] sm:$0xff]  ;;  %v184_v21 = vld [vmem:[#allocation2] sm:$0x1] }
   0xa   :  { %v248_v37 = vld [vmem:[%s381_s3] sm:$0xff]  ;;  %v249_v38 = vld [vmem:[%s381_s3 + $0x8] sm:$0xff] }
   0xb   :  { %v181_v61 = vld [vmem:[%s383_s5] sm:$0x1] }
   0xd   :  { %56 = vperm.xlu0 %254, %v38_v7  }
   0xe   :  { %46 = vperm.xlu1 %255, %v36_v8  }
  0x11   :  { %134 = vperm.xlu2 %256, %v116_v17  }
  0x15   :  { %119 = vperm.xlu0 %254, %v113_v9  }
  0x16   :  { %124 = vperm.xlu1 %255, %v114_v10  }
  0x18   :  { %234 = vmatmul.msk.bf16.gmra.mxu0 %vm69_vm1, %v247_v11 }
  0x19   :  { %187 = vperm.xlu2 %256, %v184_v21  }
  0x63   :  { %v130_v40 = vpop.permute.xlu2 %129 }
  0x6b   :  { %v135_v47 = vpop.permute.xlu2 %134 }
  0x73   :  { %v188_v62 = vpop.permute.xlu2 %187 }
  0x74   :  { %v190_v63 = vperm.slane %v188_v62, 0 }
  0x77   :  { %v52_v16 = vpop.permute.xlu0 %51 }
  0x78   :  { %v42_v15 = vpop.permute.xlu1 %41 }
  0x7f   :  { %v57_v23 = vpop.permute.xlu0 %56 }
  0x80   :  { %v47_v19 = vpop.permute.xlu1 %46 }
  0x85   :  { %v89_v12 = vpop.f32.mrf.mxu0 }
  0x86   :  { %v90_v25 = vadd.f32 %v89_v12, %v42_v15 }
  0x87   :  { %v120_v45 = vpop.permute.xlu0 %119 }
  0x88   :  { %v99_v30 = vmul.f32 0.01, %v90_v25  ;;  %v125_v44 = vpop.permute.xlu1 %124 }
  0x8a   :  { %v103_v35 = vmax.f32 %v90_v25, %v99_v30 }
  0x8d   :  { %v91_v13 = vpop.f32.mrf.mxu0 }
  0x8e   :  { %v92_v22 = vadd.f32 %v91_v13, %v47_v19 }
  0x90   :  { %v100_v28 = vmul.f32 0.01, %v92_v22 }
  0x92   :  { %v104_v33 = vmax.f32 %v92_v22, %v100_v28 }
  0x94   :  { %v111_v36 = vpack.c.bf16 %v104_v33, %v103_v35 }
  0x95   :  { %v94_v18 = vpop.f32.mrf.mxu0 }
  0x96   :  { %v95_v20 = vadd.f32 %v94_v18, %v52_v16 }
  0x98   :  { %v101_v26 = vmul.f32 0.01, %v95_v20 }
  0x9a   :  { %v105_v31 = vmax.f32 %v95_v20, %v101_v26 }
  0x9d   :  { %v96_v24 = vpop.f32.mrf.mxu0 }
  0x9e   :  { %v97_v27 = vadd.f32 %v96_v24, %v57_v23 }
  0xa0   :  { %v102_v29 = vmul.f32 0.01, %v97_v27 }
  0xa2   :  { %v106_v32 = vmax.f32 %v97_v27, %v102_v29 }
  0xa4   :  { %v112_v34 = vpack.c.bf16 %v106_v32, %v105_v31 }
  0xa6   :  { %160 = vmatpush.bf16.msra.mxu1 %v112_v34  ;;  %250 = vmatpush.bf16.msra.mxu3 %v112_v34 }
  0xaa   :  { %161 = vmatpush.bf16.msra.mxu1 %v111_v36  ;;  %251 = vmatpush.bf16.msra.mxu3 %v111_v36 }
  0xad   :  { %243 = vmatmul.msk.bf16.vlgmr.msra.gmra.mxu1 %vm147_vm2, %v248_v37  ;;  %244 = vmatmul.msk.bf16.vlgmr.msra.gmra.mxu3 %vm147_vm2, %v249_v38 }
 0x12a   :  { %v163_v39 = vpop.f32.mrf.mxu1 }
 0x12b   :  { %v164_v49 = vadd.f32 %v163_v39, %v120_v45 }
 0x12d   :  { %v173_v54 = vmul.f32 0.01, %v164_v49 }
 0x12f   :  { %v177_v59 = vmax.f32 %v164_v49, %v173_v54 }
 0x130   :  { %v168_v41 = vpop.f32.mrf.mxu3 }
 0x131   :  { %v169_v43 = vadd.f32 %v168_v41, %v130_v40 }
 0x132   :  { %v165_v42 = vpop.f32.mrf.mxu1 }
 0x133   :  { %v166_v46 = vadd.f32 %v165_v42, %v125_v44  ;;  %v175_v50 = vmul.f32 0.01, %v169_v43 }
 0x135   :  { %v174_v52 = vmul.f32 0.01, %v166_v46  ;;  %v179_v55 = vmax.f32 %v169_v43, %v175_v50 }
 0x137   :  { %v178_v57 = vmax.f32 %v166_v46, %v174_v52 }
 0x138   :  { %v170_v48 = vpop.f32.mrf.mxu3 }
 0x139   :  { %v171_v51 = vadd.f32 %v170_v48, %v135_v47  ;;  %v182_v60 = vpack.c.bf16 %v178_v57, %v177_v59 }
 0x13b   :  { %v176_v53 = vmul.f32 0.01, %v171_v51 }
 0x13d   :  { %v180_v56 = vmax.f32 %v171_v51, %v176_v53 }
 0x13f   :  { %v183_v58 = vpack.c.bf16 %v180_v56, %v179_v55 }
 0x141   :  { %200 = vmatpush.bf16.msra.mxu2 %v183_v58 }
 0x145   :  { %201 = vmatpush.bf16.msra.mxu2 %v182_v60 }
 0x148   :  { %245 = vmatmul.msk.bf16.vlgmr.msra.gmra.mxu2 %vm147_vm2, %v181_v61 }
 0x1cb   :  { %v203_v0 = vpop.f32.mrf.mxu2 }
 0x1cc   :  { %v204_v1 = vadd.f32 %v203_v0, %v190_v63 }
 0x1ce   :  { %257 = vtanh.f32 %v204_v1 }
 0x1d3   :  { %v205_v2 = vpop.f32.mrf.mxu2 }
 0x1d4   :  { %v258_v3 = vpop.eup %257 }
 0x1d5   :  { %208 = vst [vmem:[#allocation3] sm:$0x1] %v258_v3 }
 0x1d6   :  { %219 = dma.vmem_to_hbm [thread:$0]  %s215_s26, 16, %s217_s29, [#allocation4]  }
 0x1d7   :  { %283 = dma.done.wait [#allocation4], 16  }
 0x1d8   :  { %284 = vsyncadd [#allocation4], 4294967280 }
 0x1d9   :  { %224 = vsyncpa [#allocation4], 1 }

</bundles_post_ra>
